<compile_context>
chip_gen: v5e
topology: v5e:2x2
jax: 0.10.0
libtpu: 0.0.40
codegen_flags: <defaults>
</compile_context>

<pallas_src>
import numpy as np
import jax
import jax.numpy as jnp
from jax.experimental import pallas as pl
from jax.experimental.pallas import tpu as pltpu


LANE = 128


def _round_up(x, m):
    return ((x + m - 1) // m) * m


# ------------------------------------------------------------------------
# Pallas kernel: full encoder+decoder MLP for one batch tile.
# First layer is split into a speed matmul ([TB, T*N] x [T*N, 128]) and a
# time matmul ([TB, T] x [T, 128]); the N-fold tiling of the time feature is
# folded into the time weight at init, so the kernel never sees the
# interleaved (B, T, N, 2) tensor.  All widths are zero-padded to 128 lanes.
# ------------------------------------------------------------------------
def _ae_mlp_kernel(xs_ref, xt_ref,
                   w1s_ref, w1t_ref, b1_ref,
                   w2_ref, b2_ref,
                   w3_ref, b3_ref,
                   w4_ref, b4_ref,
                   o_ref):
    # encoder: Linear -> ReLU -> Linear   (bf16 MXU operands, f32 accumulate)
    h1 = (jnp.dot(xs_ref[...], w1s_ref[...], preferred_element_type=jnp.float32)
          + jnp.dot(xt_ref[...], w1t_ref[...], preferred_element_type=jnp.float32)
          + b1_ref[...])
    h1 = jnp.maximum(h1, 0.0).astype(jnp.bfloat16)

    z = jnp.dot(h1, w2_ref[...], preferred_element_type=jnp.float32) + b2_ref[...]
    z = z.astype(jnp.bfloat16)

    # decoder: Linear -> ReLU -> Linear
    h2 = jnp.dot(z, w3_ref[...], preferred_element_type=jnp.float32) + b3_ref[...]
    h2 = jnp.maximum(h2, 0.0).astype(jnp.bfloat16)

    out = jnp.dot(h2, w4_ref[...], preferred_element_type=jnp.float32) + b4_ref[...]
    o_ref[...] = out.astype(o_ref.dtype)


def autoencoder_mlp(x_speed, x_time, kp, d_out):
    """x_speed: [B, T*N] f32, x_time: [B, T] f32, kp: lane-padded params.
    Returns [B, d_out] f32."""
    B = x_speed.shape[0]
    dk_s = x_speed.shape[1]
    dk_t = x_time.shape[1]
    d_out_p = kp["w4"].shape[1]

    # Batch tile: multiple of 16 rows (bf16 sublane packing), capped at 256.
    tile_b = min(256, _round_up(max(B, 1), 16))
    b_pad = _round_up(B, tile_b)
    if b_pad != B:
        x_speed = jnp.pad(x_speed, ((0, b_pad - B), (0, 0)))
        x_time = jnp.pad(x_time, ((0, b_pad - B), (0, 0)))
    xs = x_speed.astype(jnp.bfloat16)
    xt = x_time.astype(jnp.bfloat16)

    grid = (b_pad // tile_b,)

    def x_spec(d):
        return pl.BlockSpec((tile_b, d), lambda i: (i, 0))

    def const_spec(a):
        # whole-array block, same block every grid step -> stays VMEM-resident
        return pl.BlockSpec(a.shape, lambda i: (0, 0))

    in_specs = [
        x_spec(dk_s), x_spec(dk_t),
        const_spec(kp["w1s"]), const_spec(kp["w1t"]), const_spec(kp["b1"]),
        const_spec(kp["w2"]), const_spec(kp["b2"]),
        const_spec(kp["w3"]), const_spec(kp["b3"]),
        const_spec(kp["w4"]), const_spec(kp["b4"]),
    ]
    out_spec = pl.BlockSpec((tile_b, d_out_p), lambda i: (i, 0))

    # VMEM budget: double-buffered x/out tiles + resident weights, with headroom.
    x_bytes = 2 * tile_b * (dk_s + dk_t) * 2
    o_bytes = 2 * tile_b * d_out_p * 4
    w_bytes = 2 * ((dk_s + dk_t + 2 * LANE) * LANE * 2 + LANE * d_out_p * 2
                   + 3 * LANE * 4 + d_out_p * 4)
    vmem_limit = int(min(max(4 * (x_bytes + o_bytes + w_bytes), 16 * 1024 * 1024),
                         32 * 1024 * 1024))

    y = pl.pallas_call(
        _ae_mlp_kernel,
        out_shape=jax.ShapeDtypeStruct((b_pad, d_out_p), jnp.float32),
        grid_spec=pltpu.PrefetchScalarGridSpec(
            num_scalar_prefetch=0,
            grid=grid,
            in_specs=in_specs,
            out_specs=out_spec),
        compiler_params=pltpu.CompilerParams(
            dimension_semantics=("parallel",),
            vmem_limit_bytes=vmem_limit),
    )(xs, xt,
      kp["w1s"], kp["w1t"], kp["b1"],
      kp["w2"], kp["b2"],
      kp["w3"], kp["b3"],
      kp["w4"], kp["b4"])

    return y[:B, :d_out]


# ------------------------------------------------------------------------
# Module wrapper: deterministic parameter init, time-feature folding, padding,
# and the reshape/squeeze glue from the PyTorch forward.
# ------------------------------------------------------------------------
class AutoEncoderPallas:
    def __init__(self, cfg, key):
        self.num_nodes = cfg["model"]["num_nodes"]
        self.feature_dim = cfg["model"]["feature_dim"]
        self.output_dim = cfg["model"]["output_dim"]
        self.input_window = cfg["data"]["lookback"]
        self.output_window = cfg["data"]["horizon"]
        assert self.feature_dim == 2, "module concatenates speed + time -> feature_dim must be 2"

        T, N = self.input_window, self.num_nodes
        d_in = T * N * self.feature_dim
        self.d_out = self.output_window * N * self.output_dim

        def linear_init(k, fan_in, fan_out):
            # deterministic, PyTorch-like uniform(-1/sqrt(fan_in), 1/sqrt(fan_in))
            kw, kb = jax.random.split(k)
            bound = 1.0 / np.sqrt(fan_in)
            w = jax.random.uniform(kw, (fan_in, fan_out), jnp.float32, -bound, bound)
            b = jax.random.uniform(kb, (1, fan_out), jnp.float32, -bound, bound)
            return w, b

        k1, k2, k3, k4 = jax.random.split(key, 4)
        w1, b1 = linear_init(k1, d_in, 64)
        w2, b2 = linear_init(k2, 64, 16)
        w3, b3 = linear_init(k3, 16, 64)
        w4, b4 = linear_init(k4, 64, self.d_out)
        # f32 params in the original (interleaved) layout, for reference checks
        self.params_ref = dict(w1=w1, b1=b1, w2=w2, b2=b2, w3=w3, b3=b3, w4=w4, b4=b4)

        # ---- fold the N-fold time tiling into w1 and lane-pad everything ----
        # flattened feature order is [t][n][f] with f in {speed, time}
        w1_r = w1.reshape(T, N, 2, 64)
        w1_speed = w1_r[:, :, 0, :].reshape(T * N, 64)      # rows hit by inp[b, t, n]
        w1_time = jnp.sum(w1_r[:, :, 1, :], axis=1)         # (T, 64): time[b, t] tiled over n

        h1p = _round_up(64, LANE)
        zp = _round_up(16, LANE)
        h2p = _round_up(64, LANE)
        d_out_p = _round_up(self.d_out, LANE)

        def pad2(a, rows, cols):
            return jnp.pad(a, ((0, rows - a.shape[0]), (0, cols - a.shape[1])))

        # zero-padded so garbage lanes never leak; MXU operands in bf16, biases f32
        self.kernel_params = dict(
            w1s=pad2(w1_speed, T * N, h1p).astype(jnp.bfloat16),
            w1t=pad2(w1_time, T, h1p).astype(jnp.bfloat16),
            b1=pad2(b1, 1, h1p),
            w2=pad2(w2, h1p, zp).astype(jnp.bfloat16),
            b2=pad2(b2, 1, zp),
            w3=pad2(w3, zp, h2p).astype(jnp.bfloat16),
            b3=pad2(b3, 1, h2p),
            w4=pad2(w4, h2p, d_out_p).astype(jnp.bfloat16),
            b4=pad2(b4, 1, d_out_p),
        )

    def forward(self, inp, target, input_time, target_time):
        B = inp.shape[0]
        T, N = self.input_window, self.num_nodes
        # No interleave/tile/concat HBM round trip: the N-fold tiled time feature
        # is folded into w1t, so the kernel only needs [B, T*N] and [B, T].
        x_speed = inp.reshape(B, T * N).astype(jnp.float32)
        x_time = input_time[:, :, 0].astype(jnp.float32)

        y = autoencoder_mlp(x_speed, x_time, self.kernel_params, self.d_out)  # (B, d_out)

        outputs = y.reshape(-1, self.output_window, N, self.output_dim)
        # matches torch.squeeze (also drops batch dim if B == 1, like the original)
        return jnp.squeeze(outputs)


if __name__ == "__main__":
    cfg = {
        "model": {"num_nodes": 4, "feature_dim": 2, "output_dim": 1, "device": None},
        "data": {"lookback": 8, "horizon": 8, "scalar": None},
    }
    B = 2
    T = cfg["data"]["lookback"]
    N = cfg["model"]["num_nodes"]
    H = cfg["data"]["horizon"]

    key = jax.random.PRNGKey(0)
    k_param, k_in, k_time, k_tgt, k_ttime = jax.random.split(key, 5)

    model = AutoEncoderPallas(cfg, k_param)

    inp = jax.random.normal(k_in, (B, T, N), jnp.float32)              # speed feature
    input_time = jax.random.normal(k_time, (B, T, 3), jnp.float32)     # only [:, :, 0] used
    target = jax.random.normal(k_tgt, (B, H, N), jnp.float32)          # unused by forward
    target_time = jax.random.normal(k_ttime, (B, H, 3), jnp.float32)   # unused by forward

    out = model.forward(inp, target, input_time, target_time)
    out = jax.block_until_ready(out)

    # Pure-f32 reference following the original PyTorch data path exactly.
    t_feat = input_time[:, :, 0]
    t_tiled = jnp.tile(t_feat[:, :, None], (1, 1, N))[..., None]       # (B, T, N, 1)
    x_cat = jnp.concatenate([inp[..., None], t_tiled], axis=-1)        # (B, T, N, 2)
    x_flat = x_cat.reshape(B, -1).astype(jnp.float32)
    p = model.params_ref
    h = jnp.maximum(x_flat @ p["w1"] + p["b1"], 0.0)
    z = h @ p["w2"] + p["b2"]
    h2 = jnp.maximum(z @ p["w3"] + p["b3"], 0.0)
    ref = (h2 @ p["w4"] + p["b4"]).reshape(-1, H, N, cfg["model"]["output_dim"])
    ref = jnp.squeeze(ref)

    assert out.shape == ref.shape, (out.shape, ref.shape)
    # bf16 MXU operands in the kernel -> bf16-level tolerance vs the f32 reference
    np.testing.assert_allclose(np.asarray(out), np.asarray(ref), rtol=3e-2, atol=3e-2)

    print("KERNEL_OK")
</pallas_src>

<mosaic_0001>
module attributes {stable_mosaic.version = 11 : i64} {
  func.func @_ae_mlp_kernel(%arg0: i32, %arg1: memref<16x32xbf16, #tpu.memory_space<vmem>>, %arg2: memref<16x8xbf16, #tpu.memory_space<vmem>>, %arg3: memref<32x128xbf16, #tpu.memory_space<vmem>>, %arg4: memref<8x128xbf16, #tpu.memory_space<vmem>>, %arg5: memref<1x128xf32, #tpu.memory_space<vmem>>, %arg6: memref<128x128xbf16, #tpu.memory_space<vmem>>, %arg7: memref<1x128xf32, #tpu.memory_space<vmem>>, %arg8: memref<128x128xbf16, #tpu.memory_space<vmem>>, %arg9: memref<1x128xf32, #tpu.memory_space<vmem>>, %arg10: memref<128x128xbf16, #tpu.memory_space<vmem>>, %arg11: memref<1x128xf32, #tpu.memory_space<vmem>>, %arg12: memref<16x128xf32, #tpu.memory_space<vmem>>) attributes {dimension_semantics = [#tpu.dimension_semantics<parallel>], iteration_bounds = array<i64: 1>, scalar_prefetch = 0 : i64, scratch_operands = 0 : i64, tpu.core_type = #tpu.core_type<tc>, window_params = [{transform_indices = @transform_0, window_bounds = array<i64: 16, 32>}, {transform_indices = @transform_1, window_bounds = array<i64: 16, 8>}, {pipeline_mode = #tpu.pipeline_mode<synchronous>, transform_indices = @transform_2, window_bounds = array<i64: 32, 128>}, {pipeline_mode = #tpu.pipeline_mode<synchronous>, transform_indices = @transform_3, window_bounds = array<i64: 8, 128>}, {pipeline_mode = #tpu.pipeline_mode<synchronous>, transform_indices = @transform_4, window_bounds = array<i64: 1, 128>}, {pipeline_mode = #tpu.pipeline_mode<synchronous>, transform_indices = @transform_5, window_bounds = array<i64: 128, 128>}, {pipeline_mode = #tpu.pipeline_mode<synchronous>, transform_indices = @transform_6, window_bounds = array<i64: 1, 128>}, {pipeline_mode = #tpu.pipeline_mode<synchronous>, transform_indices = @transform_7, window_bounds = array<i64: 128, 128>}, {pipeline_mode = #tpu.pipeline_mode<synchronous>, transform_indices = @transform_8, window_bounds = array<i64: 1, 128>}, {pipeline_mode = #tpu.pipeline_mode<synchronous>, transform_indices = @transform_9, window_bounds = array<i64: 128, 128>}, {pipeline_mode = #tpu.pipeline_mode<synchronous>, transform_indices = @transform_10, window_bounds = array<i64: 1, 128>}, {transform_indices = @transform_11, window_bounds = array<i64: 16, 128>}]} {
    %c0 = arith.constant 0 : index
    %c0_0 = arith.constant 0 : index
    %0 = vector.load %arg1[%c0, %c0_0] : memref<16x32xbf16, #tpu.memory_space<vmem>>, vector<16x32xbf16>
    %c0_1 = arith.constant 0 : index
    %c0_2 = arith.constant 0 : index
    %1 = vector.load %arg3[%c0_1, %c0_2] : memref<32x128xbf16, #tpu.memory_space<vmem>>, vector<32x128xbf16>
    %cst = arith.constant dense<0.000000e+00> : vector<16x128xf32>
    %2 = tpu.matmul %0, %1, %cst {dimension_numbers = #tpu.dot_dimension_numbers<[1], [0], [0], [1], [0, 0, 1, 1], [], []>} : vector<16x32xbf16>, vector<32x128xbf16>, vector<16x128xf32> -> vector<16x128xf32>
    %c0_3 = arith.constant 0 : index
    %c0_4 = arith.constant 0 : index
    %3 = vector.load %arg2[%c0_3, %c0_4] : memref<16x8xbf16, #tpu.memory_space<vmem>>, vector<16x8xbf16>
    %c0_5 = arith.constant 0 : index
    %c0_6 = arith.constant 0 : index
    %4 = vector.load %arg4[%c0_5, %c0_6] : memref<8x128xbf16, #tpu.memory_space<vmem>>, vector<8x128xbf16>
    %cst_7 = arith.constant dense<0.000000e+00> : vector<16x128xf32>
    %5 = tpu.matmul %3, %4, %cst_7 {dimension_numbers = #tpu.dot_dimension_numbers<[1], [0], [0], [1], [0, 0, 1, 1], [], []>} : vector<16x8xbf16>, vector<8x128xbf16>, vector<16x128xf32> -> vector<16x128xf32>
    %6 = arith.addf %2, %5 : vector<16x128xf32>
    %c0_8 = arith.constant 0 : index
    %c0_9 = arith.constant 0 : index
    %7 = vector.load %arg5[%c0_8, %c0_9] : memref<1x128xf32, #tpu.memory_space<vmem>>, vector<1x128xf32>
    %8 = vector.broadcast %7 : vector<1x128xf32> to vector<16x128xf32>
    %9 = arith.addf %6, %8 : vector<16x128xf32>
    %cst_10 = arith.constant 0.000000e+00 : f32
    %10 = vector.broadcast %cst_10 : f32 to vector<16x128xf32>
    %11 = arith.maximumf %9, %10 : vector<16x128xf32>
    %12 = arith.truncf %11 : vector<16x128xf32> to vector<16x128xbf16>
    %c0_11 = arith.constant 0 : index
    %c0_12 = arith.constant 0 : index
    %13 = vector.load %arg6[%c0_11, %c0_12] : memref<128x128xbf16, #tpu.memory_space<vmem>>, vector<128x128xbf16>
    %cst_13 = arith.constant dense<0.000000e+00> : vector<16x128xf32>
    %14 = tpu.matmul %12, %13, %cst_13 {dimension_numbers = #tpu.dot_dimension_numbers<[1], [0], [0], [1], [0, 0, 1, 1], [], []>} : vector<16x128xbf16>, vector<128x128xbf16>, vector<16x128xf32> -> vector<16x128xf32>
    %c0_14 = arith.constant 0 : index
    %c0_15 = arith.constant 0 : index
    %15 = vector.load %arg7[%c0_14, %c0_15] : memref<1x128xf32, #tpu.memory_space<vmem>>, vector<1x128xf32>
    %16 = vector.broadcast %15 : vector<1x128xf32> to vector<16x128xf32>
    %17 = arith.addf %14, %16 : vector<16x128xf32>
    %18 = arith.truncf %17 : vector<16x128xf32> to vector<16x128xbf16>
    %c0_16 = arith.constant 0 : index
    %c0_17 = arith.constant 0 : index
    %19 = vector.load %arg8[%c0_16, %c0_17] : memref<128x128xbf16, #tpu.memory_space<vmem>>, vector<128x128xbf16>
    %cst_18 = arith.constant dense<0.000000e+00> : vector<16x128xf32>
    %20 = tpu.matmul %18, %19, %cst_18 {dimension_numbers = #tpu.dot_dimension_numbers<[1], [0], [0], [1], [0, 0, 1, 1], [], []>} : vector<16x128xbf16>, vector<128x128xbf16>, vector<16x128xf32> -> vector<16x128xf32>
    %c0_19 = arith.constant 0 : index
    %c0_20 = arith.constant 0 : index
    %21 = vector.load %arg9[%c0_19, %c0_20] : memref<1x128xf32, #tpu.memory_space<vmem>>, vector<1x128xf32>
    %22 = vector.broadcast %21 : vector<1x128xf32> to vector<16x128xf32>
    %23 = arith.addf %20, %22 : vector<16x128xf32>
    %cst_21 = arith.constant 0.000000e+00 : f32
    %24 = vector.broadcast %cst_21 : f32 to vector<16x128xf32>
    %25 = arith.maximumf %23, %24 : vector<16x128xf32>
    %26 = arith.truncf %25 : vector<16x128xf32> to vector<16x128xbf16>
    %c0_22 = arith.constant 0 : index
    %c0_23 = arith.constant 0 : index
    %27 = vector.load %arg10[%c0_22, %c0_23] : memref<128x128xbf16, #tpu.memory_space<vmem>>, vector<128x128xbf16>
    %cst_24 = arith.constant dense<0.000000e+00> : vector<16x128xf32>
    %28 = tpu.matmul %26, %27, %cst_24 {dimension_numbers = #tpu.dot_dimension_numbers<[1], [0], [0], [1], [0, 0, 1, 1], [], []>} : vector<16x128xbf16>, vector<128x128xbf16>, vector<16x128xf32> -> vector<16x128xf32>
    %c0_25 = arith.constant 0 : index
    %c0_26 = arith.constant 0 : index
    %29 = vector.load %arg11[%c0_25, %c0_26] : memref<1x128xf32, #tpu.memory_space<vmem>>, vector<1x128xf32>
    %30 = vector.broadcast %29 : vector<1x128xf32> to vector<16x128xf32>
    %31 = arith.addf %28, %30 : vector<16x128xf32>
    %c0_27 = arith.constant 0 : index
    %c0_28 = arith.constant 0 : index
    %32 = vector.load %arg12[%c0_27, %c0_28] : memref<16x128xf32, #tpu.memory_space<vmem>>, vector<16x128xf32>
    tpu.vector_store %arg12[%c0_27, %c0_28], %31 {strides = array<i32>} : memref<16x128xf32, #tpu.memory_space<vmem>>, vector<16x128xf32>,
    return
  }
  func.func @transform_0(%arg0: i32) -> (i32, i32) {
    %c0_i32 = arith.constant 0 : i32
    %c0_i32_0 = arith.constant 0 : i32
    return %arg0, %c0_i32 : i32, i32
  }
  func.func @transform_1(%arg0: i32) -> (i32, i32) {
    %c0_i32 = arith.constant 0 : i32
    %c0_i32_0 = arith.constant 0 : i32
    return %arg0, %c0_i32 : i32, i32
  }
  func.func @transform_2(%arg0: i32) -> (i32, i32) {
    %c0_i32 = arith.constant 0 : i32
    %c0_i32_0 = arith.constant 0 : i32
    %c0_i32_1 = arith.constant 0 : i32
    return %c0_i32, %c0_i32_0 : i32, i32
  }
  func.func @transform_3(%arg0: i32) -> (i32, i32) {
    %c0_i32 = arith.constant 0 : i32
    %c0_i32_0 = arith.constant 0 : i32
    %c0_i32_1 = arith.constant 0 : i32
    return %c0_i32, %c0_i32_0 : i32, i32
  }
  func.func @transform_4(%arg0: i32) -> (i32, i32) {
    %c0_i32 = arith.constant 0 : i32
    %c0_i32_0 = arith.constant 0 : i32
    %c0_i32_1 = arith.constant 0 : i32
    return %c0_i32, %c0_i32_0 : i32, i32
  }
  func.func @transform_5(%arg0: i32) -> (i32, i32) {
    %c0_i32 = arith.constant 0 : i32
    %c0_i32_0 = arith.constant 0 : i32
    %c0_i32_1 = arith.constant 0 : i32
    return %c0_i32, %c0_i32_0 : i32, i32
  }
  func.func @transform_6(%arg0: i32) -> (i32, i32) {
    %c0_i32 = arith.constant 0 : i32
    %c0_i32_0 = arith.constant 0 : i32
    %c0_i32_1 = arith.constant 0 : i32
    return %c0_i32, %c0_i32_0 : i32, i32
  }
  func.func @transform_7(%arg0: i32) -> (i32, i32) {
    %c0_i32 = arith.constant 0 : i32
    %c0_i32_0 = arith.constant 0 : i32
    %c0_i32_1 = arith.constant 0 : i32
    return %c0_i32, %c0_i32_0 : i32, i32
  }
  func.func @transform_8(%arg0: i32) -> (i32, i32) {
    %c0_i32 = arith.constant 0 : i32
    %c0_i32_0 = arith.constant 0 : i32
    %c0_i32_1 = arith.constant 0 : i32
    return %c0_i32, %c0_i32_0 : i32, i32
  }
  func.func @transform_9(%arg0: i32) -> (i32, i32) {
    %c0_i32 = arith.constant 0 : i32
    %c0_i32_0 = arith.constant 0 : i32
    %c0_i32_1 = arith.constant 0 : i32
    return %c0_i32, %c0_i32_0 : i32, i32
  }
  func.func @transform_10(%arg0: i32) -> (i32, i32) {
    %c0_i32 = arith.constant 0 : i32
    %c0_i32_0 = arith.constant 0 : i32
    %c0_i32_1 = arith.constant 0 : i32
    return %c0_i32, %c0_i32_0 : i32, i32
  }
  func.func @transform_11(%arg0: i32) -> (i32, i32) {
    %c0_i32 = arith.constant 0 : i32
    %c0_i32_0 = arith.constant 0 : i32
    return %arg0, %c0_i32 : i32, i32
  }
}

</mosaic_0001>

<bundles_post_ra>
// kernel: tpu_custom_call.1
= control target key start
LH: loop header
LB: loop body
LE: loop exit
PB: predicated region body
PF: predicated region fallthrough
CT: control target
= control target key end

     0   :  { %16 = vsyncpa [#allocation3], 0  ;;  %s844_s0 = inlined_call_operand.vmem [shape: bf16[16,32], index: 0, kind: input, shape index: {}]   ;;  %s845_s1 = inlined_call_operand.vmem [shape: bf16[16,8], index: 1, kind: input, shape index: {}]   ;;  %s846_s2 = inlined_call_operand.hbm [shape: bf16[32,128], index: 2, kind: input, shape index: {}]   ;;  %s847_s3 = inlined_call_operand.vmem [shape: bf16[8,128], index: 3, kind: input, shape index: {}]   ;;  %s848_s4 = inlined_call_operand.vmem [shape: f32[1,128], index: 4, kind: input, shape index: {}]   ;;  %s849_s5 = inlined_call_operand.hbm [shape: bf16[128,128], index: 5, kind: input, shape index: {}]   ;;  %s850_s6 = inlined_call_operand.vmem [shape: f32[1,128], index: 6, kind: input, shape index: {}]   ;;  %s851_s7 = inlined_call_operand.hbm [shape: bf16[128,128], index: 7, kind: input, shape index: {}]   ;;  %s852_s8 = inlined_call_operand.vmem [shape: f32[1,128], index: 8, kind: input, shape index: {}]   ;;  %s853_s9 = inlined_call_operand.hbm [shape: bf16[128,128], index: 9, kind: input, shape index: {}]   ;;  %s854_s10 = inlined_call_operand.vmem [shape: f32[1,128], index: 10, kind: input, shape index: {}]   ;;  %s855_s11 = inlined_call_operand.hbm [shape: f32[16,128], index: 11, kind: output, shape index: {}]  }
   0x1   :  { %17 = vsyncpa [#allocation6], 0 }
   0x2   :  { %18 = vsyncpa [#allocation9], 0 }
   0x3   :  { %19 = vsyncpa [#allocation4], 0  ;;  %s45_s19 = sshll.u32 %s849_s5, 4  ;;  %s739_s20 = smov [#allocation5]   ;;  %s46_s19 = int_to_ptr.hbm [resolvable:$true] %s45_s19 }
   0x4   :  { %s47_s21 = sshll.u32 %s739_s20, 4  ;;  %s28_s24 = sshll.u32 %s846_s2, 4  ;;  %s48_s21 = int_to_ptr.vmem [resolvable:$true] %s47_s21  ;;  %s29_s24 = int_to_ptr.hbm [resolvable:$true] %s28_s24 }
   0x5   :  { %s740_s25 = smov 64   ;;  %s741_s26 = smov 4  }
   0x6   :  { %53 = dma.hbm_to_vmem [thread:$0]  %s46_s19, 1024, %s48_s21, [#allocation6], %s740_s25, %s740_s25, %s741_s26  }
   0x7   :  { %s742_s27 = smov [#allocation2]   ;;  %s60_s12 = sshll.u32 %s851_s7, 4  ;;  %s61_s12 = int_to_ptr.hbm [resolvable:$true] %s60_s12 }
   0x8   :  { %s30_s28 = sshll.u32 %s742_s27, 4  ;;  %s75_s14 = sshll.u32 %s853_s9, 4  ;;  %s31_s28 = int_to_ptr.vmem [resolvable:$true] %s30_s28  ;;  %s76_s14 = int_to_ptr.hbm [resolvable:$true] %s75_s14 }
   0x9   :  { %36 = dma.hbm_to_vmem [thread:$0]  %s29_s24, 256, %s31_s28, [#allocation3], %s740_s25, %s740_s25, %s741_s26  }
   0xa   :  { %s743_s15 = smov [#allocation7]   ;;  %s744_s2 = smov [#allocation8]  }
   0xb   :  { %s62_s16 = sshll.u32 %s743_s15, 4  ;;  %s77_s17 = sshll.u32 %s744_s2, 4  ;;  %s63_s16 = int_to_ptr.vmem [resolvable:$true] %s62_s16  ;;  %s78_s17 = int_to_ptr.vmem [resolvable:$true] %s77_s17 }
   0xc   :  { %68 = dma.hbm_to_vmem [thread:$0]  %s61_s12, 1024, %s63_s16, [#allocation6], %s740_s25, %s740_s25, %s741_s26  }
   0xd   :  { %83 = dma.hbm_to_vmem [thread:$0]  %s76_s14, 1024, %s78_s17, [#allocation9], %s740_s25, %s740_s25, %s741_s26  }
   0xe   :  { %731 = dma.done.wait [#allocation3], 256  }
   0xf   :  { %732 = vsyncadd [#allocation3], 4294967040 }
  0x10   :  { %733 = dma.done.wait [#allocation6], 2048  }
  0x11   :  { %734 = vsyncadd [#allocation6], 4294965248 }
  0x12   :  { %735 = dma.done.wait [#allocation9], 1024  }
  0x13   :  { %736 = vsyncadd [#allocation9], 4294966272  ;;  %vm121_vm0 = vcmask 1043456   ;;  %v111_v0 = vld [vmem:[%s847_s3] sm:$0xf]  ;;  %v572_v1 = vld [vmem:[#allocation2 + $0x8] sm:$0xff] }
  0x14   :  { %v123_v2 = vsel %vm121_vm0, %v111_v0, 0  ;;  %v573_v3 = vld [vmem:[%s845_s1] sm:$0xff]  ;;  %vm117_vm1 = vcmask 64512   ;;  %vm156_vm2 = vcmask 261120   ;;  %v581_v6 = vld [vmem:[#allocation5 + $0x38] sm:$0xff]  ;;  %v579_v8 = vld [vmem:[#allocation5 + $0x28] sm:$0xff] }
  0x15   :  { %132 = vmatpush.bf16.msra.mxu1 %v123_v2  ;;  %v571_v4 = vld [vmem:[#allocation2] sm:$0xff]  ;;  %251 = vmatpush.bf16.msra.mxu2 %v581_v6  ;;  %v578_v9 = vld [vmem:[#allocation5 + $0x20] sm:$0xff]  ;;  %v577_v10 = vld [vmem:[#allocation5 + $0x18] sm:$0xff]  ;;  %s745_s25 = smov [#allocation10]   ;;  %s746_s29 = smov 128  }
  0x16   :  { %v570_v5 = vld [vmem:[%s844_s0] sm:$0xff]  ;;  %v575_v12 = vld [vmem:[#allocation5 + $0x8] sm:$0xff]  ;;  %v574_v13 = vld [vmem:[#allocation5] sm:$0xff]  ;;  %s439_s26 = sshll.u32 %s745_s25, 4  ;;  %s747_s30 = smov 8   ;;  %s440_s26 = int_to_ptr.vmem [resolvable:$true] %s439_s26 }
  0x17   :  { %v580_v7 = vld [vmem:[#allocation5 + $0x30] sm:$0xff]  ;;  %v589_v15 = vld [vmem:[#allocation7 + $0x38] sm:$0xff]  ;;  %v587_v17 = vld [vmem:[#allocation7 + $0x28] sm:$0xff] }
  0x18   :  { %460 = vmatmul.msk.bf16.vlgmr.msra.gmra.mxu1 %vm117_vm1, %v573_v3  ;;  %v576_v11 = vld [vmem:[#allocation5 + $0x10] sm:$0xff]  ;;  %334 = vmatpush.bf16.msra.mxu3 %v589_v15  ;;  %v586_v19 = vld [vmem:[#allocation7 + $0x20] sm:$0xff]  ;;  %v585_v20 = vld [vmem:[#allocation7 + $0x18] sm:$0xff] }
  0x19   :  { %166 = vmatpush.bf16.msrb.mxu1 %v572_v1  ;;  %252 = vmatpush.bf16.msra.mxu2 %v580_v7  ;;  %v588_v16 = vld [vmem:[#allocation7 + $0x30] sm:$0xff]  ;;  %v583_v32 = vld [vmem:[#allocation7 + $0x8] sm:$0xff]  ;;  %v582_v33 = vld [vmem:[#allocation7] sm:$0xff] }
  0x1a   :  { %v607_v23 = vld [vmem:[%s848_s4] ss:$0 sm:$0xff]  ;;  %v597_v34 = vld [vmem:[#allocation8 + $0x38] sm:$0xff]  ;;  %v595_v36 = vld [vmem:[#allocation8 + $0x28] sm:$0xff] }
  0x1b   :  { %v584_v31 = vld [vmem:[#allocation7 + $0x10] sm:$0xff]  ;;  %419 = vmatpush.bf16.msra.mxu0 %v597_v34  ;;  %v594_v37 = vld [vmem:[#allocation8 + $0x20] sm:$0xff]  ;;  %v593_v44 = vld [vmem:[#allocation8 + $0x18] sm:$0xff] }
  0x1c   :  { %335 = vmatpush.bf16.msra.mxu3 %v588_v16  ;;  %v596_v35 = vld [vmem:[#allocation8 + $0x30] sm:$0xff]  ;;  %v591_v46 = vld [vmem:[#allocation8 + $0x8] sm:$0xff]  ;;  %v590_v47 = vld [vmem:[#allocation8] sm:$0xff] }
  0x1d   :  { %167 = vmatpush.bf16.msrb.mxu1 %v571_v4  ;;  %253 = vmatpush.bf16.msra.mxu2 %v579_v8  ;;  %v608_v39 = vld [vmem:[%s850_s6] ss:$0 sm:$0xff] }
  0x1e   :  { %v592_v45 = vld [vmem:[#allocation8 + $0x10] sm:$0xff] }
  0x1f   :  { %420 = vmatpush.bf16.msra.mxu0 %v596_v35  ;;  %v609_v49 = vld [vmem:[%s852_s8] ss:$0 sm:$0xff]  ;;  %s441_s8 = sshll.u32 %s855_s11, 4  ;;  %s442_s8 = int_to_ptr.hbm [resolvable:$true] %s441_s8 }
  0x20   :  { %336 = vmatpush.bf16.msra.mxu3 %v587_v17  ;;  %v610_v56 = vld [vmem:[%s854_s10] ss:$0 sm:$0xff] }
  0x21   :  { %254 = vmatpush.bf16.msra.mxu2 %v578_v9 }
  0x23   :  { %421 = vmatpush.bf16.msra.mxu0 %v595_v36 }
  0x24   :  { %337 = vmatpush.bf16.msra.mxu3 %v586_v19 }
  0x25   :  { %255 = vmatpush.bf16.msra.mxu2 %v577_v10 }
  0x27   :  { %422 = vmatpush.bf16.msra.mxu0 %v594_v37 }
  0x28   :  { %473 = vmatmul.msk.bf16.vlgmr.msrb.gmra.mxu1 %vm156_vm2, %v570_v5  ;;  %338 = vmatpush.bf16.msra.mxu3 %v585_v20 }
  0x29   :  { %256 = vmatpush.bf16.msra.mxu2 %v576_v11 }
  0x2b   :  { %423 = vmatpush.bf16.msra.mxu0 %v593_v44 }
  0x2c   :  { %339 = vmatpush.bf16.msra.mxu3 %v584_v31 }
  0x2d   :  { %257 = vmatpush.bf16.msra.mxu2 %v575_v12 }
  0x2f   :  { %424 = vmatpush.bf16.msra.mxu0 %v592_v45 }
  0x30   :  { %340 = vmatpush.bf16.msra.mxu3 %v583_v32 }
  0x31   :  { %258 = vmatpush.bf16.msra.mxu2 %v574_v13 }
  0x33   :  { %425 = vmatpush.bf16.msra.mxu0 %v591_v46 }
  0x34   :  { %341 = vmatpush.bf16.msra.mxu3 %v582_v33 }
  0x37   :  { %426 = vmatpush.bf16.msra.mxu0 %v590_v47 }
  0x95   :  { %v134_v14 = vpop.f32.mrf.mxu1 }
  0x9d   :  { %v136_v18 = vpop.f32.mrf.mxu1 }
  0xa5   :  { %v169_v21 = vpop.f32.mrf.mxu1 }
  0xa6   :  { %v170_v22 = vadd.f32 %v169_v21, %v134_v14 }
  0xa8   :  { %v178_v25 = vadd.f32 %v607_v23, %v170_v22 }
  0xaa   :  { %v180_v28 = vmax.f32 %v178_v25, 0.0 }
  0xad   :  { %v171_v24 = vpop.f32.mrf.mxu1 }
  0xae   :  { %v172_v26 = vadd.f32 %v171_v24, %v136_v18 }
  0xb0   :  { %v179_v27 = vadd.f32 %v607_v23, %v172_v26 }
  0xb2   :  { %v181_v29 = vmax.f32 %v179_v27, 0.0 }
  0xb4   :  { %v182_v30 = vpack.c.bf16 %v181_v29, %v180_v28 }
  0xb6   :  { %259 = vmatmul.bf16.vlgmr.msra.gmra.mxu2 %v182_v30 }
 0x139   :  { %v260_v38 = vpop.f32.mrf.mxu2 }
 0x13a   :  { %v261_v41 = vadd.f32 %v608_v39, %v260_v38 }
 0x141   :  { %v262_v40 = vpop.f32.mrf.mxu2 }
 0x142   :  { %v263_v42 = vadd.f32 %v608_v39, %v262_v40 }
 0x144   :  { %v265_v43 = vpack.c.bf16 %v263_v42, %v261_v41 }
 0x146   :  { %342 = vmatmul.bf16.vlgmr.msra.gmra.mxu3 %v265_v43 }
 0x1c9   :  { %v343_v48 = vpop.f32.mrf.mxu3 }
 0x1ca   :  { %v344_v50 = vadd.f32 %v609_v49, %v343_v48 }
 0x1cc   :  { %v348_v53 = vmax.f32 %v344_v50, 0.0 }
 0x1d1   :  { %v345_v51 = vpop.f32.mrf.mxu3 }
 0x1d2   :  { %v346_v52 = vadd.f32 %v609_v49, %v345_v51 }
 0x1d4   :  { %v349_v54 = vmax.f32 %v346_v52, 0.0 }
 0x1d6   :  { %v350_v55 = vpack.c.bf16 %v349_v54, %v348_v53 }
 0x1d8   :  { %427 = vmatmul.bf16.vlgmr.msra.gmra.mxu0 %v350_v55 }
 0x255   :  { %v428_v57 = vpop.f32.mrf.mxu0 }
 0x256   :  { %v429_v58 = vadd.f32 %v610_v56, %v428_v57 }
 0x258   :  { %433 = vst [vmem:[#allocation10] sm:$0xff] %v429_v58 }
 0x25d   :  { %v430_v59 = vpop.f32.mrf.mxu0 }
 0x25e   :  { %v431_v60 = vadd.f32 %v610_v56, %v430_v59 }
 0x260   :  { %434 = vst [vmem:[#allocation10 + $0x8] sm:$0xff] %v431_v60 }
 0x261   :  { %447 = dma.vmem_to_hbm [thread:$0]  %s440_s26, 256, %s442_s8, [#allocation4], %s746_s29, %s746_s29, %s747_s30  }
 0x262   :  { %737 = dma.done.wait [#allocation4], 256  }
 0x263   :  { %738 = vsyncadd [#allocation4], 4294967040 }
 0x264   :  { %452 = vsyncpa [#allocation3], 1 }
 0x265   :  { %453 = vsyncpa [#allocation6], 1 }
 0x266   :  { %454 = vsyncpa [#allocation9], 1 }
 0x267   :  { %455 = vsyncpa [#allocation4], 1 }

</bundles_post_ra>
